<compile_context>
chip_gen: v7x
topology: tpu7x:2x2x1
jax: 0.10.0
libtpu: 0.0.40
codegen_flags: <defaults>
</compile_context>

<pallas_src>
import jax
import jax.numpy as jnp
from jax.experimental import pallas as pl
from jax.experimental.pallas import tpu as pltpu


def _round_up(x: int, m: int) -> int:
    return ((x + m - 1) // m) * m


def _gating_kernel(hs_ref, hu_ref, w_ref, o_ref, lhs_ref):
    d = hs_ref.shape[-1]
    hs = hs_ref[...]
    hu = hu_ref[...]

    # Build (tm, 2D) LHS in VMEM so one MXU matmul covers both projections:
    #   [hs | hu] @ [w_s ; w_u] = hs @ w_s + hu @ w_u
    lhs_ref[:, :d] = hs
    lhs_ref[:, d:] = hu

    logits = jnp.dot(lhs_ref[...], w_ref[...],
                     preferred_element_type=jnp.float32)
    g = jax.nn.sigmoid(logits)

    # h_s * G + h_user * (1 - G)  ==  h_user + G * (h_s - h_user)
    o_ref[...] = (hu + g * (hs - hu)).astype(o_ref.dtype)


def neural_gating_net(h_s, h_user, w_s, w_u, *, tm=512):
    """Pallas implementation of NeuralGatingNet.forward.

    h_s, h_user: (I, B, D) float32
    w_s, w_u:    (D, D)    float32
    returns:     (I, B, D) float32
    """
    I, B, D = h_s.shape
    M = I * B

    hs2 = h_s.reshape(M, D)
    hu2 = h_user.reshape(M, D)

    # One-time, tiny: concatenate weights along K so the kernel does a single
    # (tm, 2D) x (2D, D) matmul.
    w_cat = jnp.concatenate([w_s, w_u], axis=0)  # (2D, D)

    # Aligned row tile: multiple of 8 sublanes, no larger than (padded) M.
    tm = max(8, min(int(tm), _round_up(M, 8)))
    tm = _round_up(tm, 8)

    # Pad rows to a multiple of tm (keeps a fixed aligned tile + pipelining
    # instead of collapsing to one giant tile for awkward M).
    M_pad = _round_up(M, tm)
    if M_pad != M:
        pad = M_pad - M
        hs2 = jnp.pad(hs2, ((0, pad), (0, 0)))
        hu2 = jnp.pad(hu2, ((0, pad), (0, 0)))

    grid = (M_pad // tm,)

    # Explicit VMEM budget (keeps the kernel portable to v7x's 64 MiB VMEM).
    bytes_per = 4
    vmem_budget = (
        3 * (tm * D * bytes_per) * 2        # hs, hu, out tiles, double-buffered
        + (2 * D) * D * bytes_per * 2       # resident concat weight (2 bufs)
        + tm * (2 * D) * bytes_per          # LHS scratch
    )
    vmem_limit = min(max(int(vmem_budget * 1.5), 8 << 20), 64 << 20)

    cost = pl.CostEstimate(
        flops=2 * M * (2 * D) * D,                       # fused matmul
        transcendentals=M * D,                           # sigmoid exp
        bytes_accessed=3 * M * D * bytes_per + 2 * D * D * bytes_per,
    )

    out = pl.pallas_call(
        _gating_kernel,
        out_shape=jax.ShapeDtypeStruct((M_pad, D), h_s.dtype),
        grid_spec=pltpu.PrefetchScalarGridSpec(
            num_scalar_prefetch=0,
            grid=grid,
            in_specs=[
                pl.BlockSpec((tm, D), lambda i: (i, 0)),       # h_s rows
                pl.BlockSpec((tm, D), lambda i: (i, 0)),       # h_user rows
                pl.BlockSpec((2 * D, D), lambda i: (0, 0)),    # [w_s; w_u] resident
            ],
            out_specs=pl.BlockSpec((tm, D), lambda i: (i, 0)),
            scratch_shapes=[pltpu.VMEM((tm, 2 * D), jnp.float32)],
        ),
        compiler_params=pltpu.CompilerParams(
            dimension_semantics=("parallel",),
            vmem_limit_bytes=vmem_limit,
        ),
        cost_estimate=cost,
    )(hs2, hu2, w_cat)

    return out[:M].reshape(I, B, D)


def _reference(h_s, h_user, w_s, w_u):
    logits_s = jnp.einsum("ibd,dh->ibh", h_s, w_s)
    logits_u = jnp.einsum("ibd,dh->ibh", h_user, w_u)
    g = jax.nn.sigmoid(logits_s + logits_u)
    return h_s * g + h_user * (1.0 - g)


if __name__ == "__main__":
    key = jax.random.PRNGKey(0)
    k1, k2, k3, k4 = jax.random.split(key, 4)

    I, B, D = 8, 4, 128   # seq=8, batch=4, d_model=128

    h_s = jax.random.normal(k1, (I, B, D), dtype=jnp.float32)
    h_user = jax.random.normal(k2, (I, B, D), dtype=jnp.float32)
    # deterministic parameter init (module declares uninitialized (D, D) params)
    w_s = jax.random.normal(k3, (D, D), dtype=jnp.float32) * 0.02
    w_u = jax.random.normal(k4, (D, D), dtype=jnp.float32) * 0.02

    out = neural_gating_net(h_s, h_user, w_s, w_u)
    out = jax.block_until_ready(out)

    ref = _reference(h_s, h_user, w_s, w_u)
    assert out.shape == (I, B, D)
    assert jnp.allclose(out, ref, atol=1e-4, rtol=1e-4)

    print("KERNEL_OK")
</pallas_src>

<mosaic_0001>
module attributes {stable_mosaic.version = 11 : i64} {
  func.func @_gating_kernel(%arg0: i32, %arg1: memref<32x128xf32, #tpu.memory_space<vmem>>, %arg2: memref<32x128xf32, #tpu.memory_space<vmem>>, %arg3: memref<256x128xf32, #tpu.memory_space<vmem>>, %arg4: memref<32x128xf32, #tpu.memory_space<vmem>>, %arg5: memref<32x256xf32, #tpu.memory_space<vmem>>) attributes {dimension_semantics = [#tpu.dimension_semantics<parallel>], iteration_bounds = array<i64: 1>, scalar_prefetch = 0 : i64, scratch_operands = 1 : i64, tpu.core_type = #tpu.core_type<tc>, window_params = [{transform_indices = @transform_0, window_bounds = array<i64: 32, 128>}, {transform_indices = @transform_1, window_bounds = array<i64: 32, 128>}, {pipeline_mode = #tpu.pipeline_mode<synchronous>, transform_indices = @transform_2, window_bounds = array<i64: 256, 128>}, {transform_indices = @transform_3, window_bounds = array<i64: 32, 128>}]} {
    %c0 = arith.constant 0 : index
    %c0_0 = arith.constant 0 : index
    %0 = vector.load %arg1[%c0, %c0_0] : memref<32x128xf32, #tpu.memory_space<vmem>>, vector<32x128xf32>
    %c0_1 = arith.constant 0 : index
    %c0_2 = arith.constant 0 : index
    %1 = vector.load %arg2[%c0_1, %c0_2] : memref<32x128xf32, #tpu.memory_space<vmem>>, vector<32x128xf32>
    %c0_3 = arith.constant 0 : index
    %c0_4 = arith.constant 0 : index
    %2 = vector.load %arg5[%c0_3, %c0_4] : memref<32x256xf32, #tpu.memory_space<vmem>>, vector<32x128xf32>
    tpu.vector_store %arg5[%c0_3, %c0_4], %0 {strides = array<i32>} : memref<32x256xf32, #tpu.memory_space<vmem>>, vector<32x128xf32>,
    %c0_5 = arith.constant 0 : index
    %c128 = arith.constant 128 : index
    %3 = vector.load %arg5[%c0_5, %c128] : memref<32x256xf32, #tpu.memory_space<vmem>>, vector<32x128xf32>
    tpu.vector_store %arg5[%c0_5, %c128], %1 {strides = array<i32>} : memref<32x256xf32, #tpu.memory_space<vmem>>, vector<32x128xf32>,
    %c0_6 = arith.constant 0 : index
    %c0_7 = arith.constant 0 : index
    %4 = vector.load %arg5[%c0_6, %c0_7] : memref<32x256xf32, #tpu.memory_space<vmem>>, vector<32x256xf32>
    %c0_8 = arith.constant 0 : index
    %c0_9 = arith.constant 0 : index
    %5 = vector.load %arg3[%c0_8, %c0_9] : memref<256x128xf32, #tpu.memory_space<vmem>>, vector<256x128xf32>
    %cst = arith.constant dense<0.000000e+00> : vector<32x128xf32>
    %6 = tpu.matmul %4, %5, %cst {dimension_numbers = #tpu.dot_dimension_numbers<[1], [0], [0], [1], [0, 0, 1, 1], [], []>} : vector<32x256xf32>, vector<256x128xf32>, vector<32x128xf32> -> vector<32x128xf32>
    %7 = arith.negf %6 : vector<32x128xf32>
    %8 = math.exp %7 : vector<32x128xf32>
    %cst_10 = arith.constant 1.000000e+00 : f32
    %9 = vector.broadcast %cst_10 : f32 to vector<32x128xf32>
    %10 = arith.addf %9, %8 : vector<32x128xf32>
    %11 = arith.divf %9, %10 : vector<32x128xf32>
    %12 = arith.subf %0, %1 : vector<32x128xf32>
    %13 = arith.mulf %11, %12 : vector<32x128xf32>
    %14 = arith.addf %1, %13 : vector<32x128xf32>
    %c0_11 = arith.constant 0 : index
    %c0_12 = arith.constant 0 : index
    %15 = vector.load %arg4[%c0_11, %c0_12] : memref<32x128xf32, #tpu.memory_space<vmem>>, vector<32x128xf32>
    tpu.vector_store %arg4[%c0_11, %c0_12], %14 {strides = array<i32>} : memref<32x128xf32, #tpu.memory_space<vmem>>, vector<32x128xf32>,
    return
  }
  func.func @transform_0(%arg0: i32) -> (i32, i32) {
    %c0_i32 = arith.constant 0 : i32
    %c0_i32_0 = arith.constant 0 : i32
    return %arg0, %c0_i32 : i32, i32
  }
  func.func @transform_1(%arg0: i32) -> (i32, i32) {
    %c0_i32 = arith.constant 0 : i32
    %c0_i32_0 = arith.constant 0 : i32
    return %arg0, %c0_i32 : i32, i32
  }
  func.func @transform_2(%arg0: i32) -> (i32, i32) {
    %c0_i32 = arith.constant 0 : i32
    %c0_i32_0 = arith.constant 0 : i32
    %c0_i32_1 = arith.constant 0 : i32
    return %c0_i32, %c0_i32_0 : i32, i32
  }
  func.func @transform_3(%arg0: i32) -> (i32, i32) {
    %c0_i32 = arith.constant 0 : i32
    %c0_i32_0 = arith.constant 0 : i32
    return %arg0, %c0_i32 : i32, i32
  }
}

</mosaic_0001>

<bundles_post_ra>
// kernel: tpu_custom_call.1
= control target key start
LH: loop header
LB: loop body
LE: loop exit
PB: predicated region body
PF: predicated region fallthrough
CT: control target
= control target key end

     0   :  { %8 = vsyncpa [#allocation4], 0  ;;  %s570_s0 = inlined_call_operand.hbm [shape: f32[32,128], index: 0, kind: input, shape index: {}]   ;;  %s571_s1 = inlined_call_operand.hbm [shape: f32[32,128], index: 1, kind: input, shape index: {}]   ;;  %s572_s2 = inlined_call_operand.hbm [shape: f32[256,128], index: 2, kind: input, shape index: {}]   ;;  %s573_s3 = inlined_call_operand.hbm [shape: f32[32,128], index: 3, kind: output, shape index: {}]  }
   0x1   :  { %9 = vsyncpa [#allocation7], 0 }
   0x2   :  { %10 = vsyncpa [#allocation5], 0  ;;  %s467_s12 = smov [#allocation6]   ;;  %s468_s14 = smov [#allocation3]  }
   0x3   :  { %s28_s13 = sshll.u32 %s467_s12, 4  ;;  %s16_s15 = sshll.u32 %s468_s14, 4  ;;  %s29_s13 = int_to_ptr.vmem [resolvable:$true] %s28_s13  ;;  %s493_s15 = int_to_ptr.vmem [resolvable:$true] %s16_s15 }
   0x4   :  { %s373_s18 = scalar_lea.hbm %s571_s1, 512 }
   0x5   :  { %p374_p0 = scmp.ne.s32.totalorder %s571_s1, %s373_s18  ;;  %p377_p1 = scmp.lt.u32.totalorder %s373_s18, %s571_s1 }
   0x7   :  { %p379_p2 = pnand %p377_p1, %p374_p0 }
   0x9   :  { %382 = shalt.err (!%p379_p2)
}
   0xa   :  { %s383_s23 = scalar_lea.vmem %s29_s13, 512  ;;  %p388_p4 = scmp.lt.s32.totalorder %s29_s13, %s29_s13 }
   0xb   :  { %p384_p3 = scmp.ne.s32.totalorder %s29_s13, %s383_s23  ;;  %p389_p5 = scmp.lt.s32.totalorder %s383_s23, %s383_s23 }
   0xd   :  { %p390_p6 = por %p389_p5, %p388_p4 }
   0xf   :  { %p391_p7 = pnand %p390_p6, %p384_p3 }
  0x11   :  { %394 = shalt.err (!%p391_p7)
}
  0x12   :  { %s469_s24 = smov 128   ;;  %s470_s25 = smov 8  }
  0x13   :  { %34 = dma.hbm_to_vmem [thread:$0]  %s571_s1, 512, %s29_s13, [#allocation7], %s469_s24, %s469_s24, %s470_s25  }
  0x14   :  { %s395_s30 = scalar_lea.hbm %s570_s0, 512 }
  0x15   :  { %p396_p8 = scmp.ne.s32.totalorder %s570_s0, %s395_s30  ;;  %p399_p9 = scmp.lt.u32.totalorder %s395_s30, %s570_s0 }
  0x17   :  { %p401_p10 = pnand %p399_p9, %p396_p8 }
  0x19   :  { %404 = shalt.err (!%p401_p10)
}
  0x1a   :  { %s405_s8 = scalar_lea.vmem %s493_s15, 512  ;;  %p410_p12 = scmp.lt.s32.totalorder %s493_s15, %s493_s15 }
  0x1b   :  { %p406_p11 = scmp.ne.s32.totalorder %s493_s15, %s405_s8  ;;  %p411_p13 = scmp.lt.s32.totalorder %s405_s8, %s405_s8 }
  0x1d   :  { %p412_p0 = por %p411_p13, %p410_p12 }
  0x1f   :  { %p413_p1 = pnand %p412_p0, %p406_p11 }
  0x21   :  { %416 = shalt.err (!%p413_p1)
}
  0x22   :  { %22 = dma.hbm_to_vmem [thread:$0]  %s570_s0, 512, %s493_s15, [#allocation4], %s469_s24, %s469_s24, %s470_s25  }
  0x23   :  { %s471_s10 = smov [#allocation8]   ;;  %s417_s14 = scalar_lea.hbm %s572_s2, 4096 }
  0x24   :  { %s40_s11 = sshll.u32 %s471_s10, 4  ;;  %p418_p2 = scmp.ne.s32.totalorder %s572_s2, %s417_s14  ;;  %s41_s11 = int_to_ptr.vmem [resolvable:$true] %s40_s11 }
  0x25   :  { %p421_p3 = scmp.lt.u32.totalorder %s417_s14, %s572_s2 }
  0x27   :  { %p423_p4 = pnand %p421_p3, %p418_p2 }
  0x29   :  { %426 = shalt.err (!%p423_p4)
}
  0x2a   :  { %s427_s20 = scalar_lea.vmem %s41_s11, 4096  ;;  %p432_p6 = scmp.lt.s32.totalorder %s41_s11, %s41_s11 }
  0x2b   :  { %p428_p5 = scmp.ne.s32.totalorder %s41_s11, %s427_s20  ;;  %p433_p7 = scmp.lt.s32.totalorder %s427_s20, %s427_s20 }
  0x2d   :  { %p434_p8 = por %p433_p7, %p432_p6 }
  0x2f   :  { %p435_p9 = pnand %p434_p8, %p428_p5 }
  0x31   :  { %438 = shalt.err (!%p435_p9)
}
  0x32   :  { %46 = dma.hbm_to_vmem [thread:$0]  %s572_s2, 4096, %s41_s11, [#allocation7], %s469_s24, %s469_s24, %s470_s25  }
  0x33   :  { %461 = dma.done.wait [#allocation4], 512  }
  0x34   :  { %462 = vsyncadd [#allocation4], 4294966784 }
  0x35   :  { %463 = dma.done.wait [#allocation7], 4608  }
  0x36   :  { %464 = vsyncadd [#allocation7], 4294962688  ;;  %v96_v0 = vld [vmem:[#allocation8 + $0x80] sm:$0xff]  ;;  %v97_v1 = vld [vmem:[#allocation8 + $0x88] sm:$0xff]  ;;  %s472_s2 = smov [#allocation9]  }
  0x37   :  { %v80_v2 = vld [vmem:[#allocation8] sm:$0xff]  ;;  %v303_v3 = vpack.c.bf16 %v97_v1, %v96_v0  ;;  %v81_v4 = vld [vmem:[#allocation8 + $0x8] sm:$0xff]  ;;  %v98_v5 = vld [vmem:[#allocation8 + $0x90] sm:$0xff]  ;;  %s242_s21 = sshll.u32 %s472_s2, 4  ;;  %s243_s21 = int_to_ptr.vmem [resolvable:$true] %s242_s21 }
  0x38   :  { %v99_v6 = vld [vmem:[#allocation8 + $0x98] sm:$0xff]  ;;  %v305_v7 = vpack.c.bf16 %v81_v4, %v80_v2  ;;  %v82_v9 = vld [vmem:[#allocation8 + $0x10] sm:$0xff]  ;;  %v100_v11 = vld [vmem:[#allocation8 + $0xa0] sm:$0xff]  ;;  %s439_s22 = scalar_lea.vmem %s243_s21, 512  ;;  %p444_p11 = scmp.lt.s32.totalorder %s243_s21, %s243_s21 }
  0x39   :  { %v307_v8 = vpack.c.bf16 %v99_v6, %v98_v5  ;;  %v83_v10 = vld [vmem:[#allocation8 + $0x18] sm:$0xff]  ;;  %304 = vmatprep.subr.bf16.mxu0 %v303_v3  ;;  %335 = vmatprep.subr.bf16.mxu1 %v303_v3  ;;  %v101_v12 = vld [vmem:[#allocation8 + $0xa8] sm:$0xff]  ;;  %v84_v15 = vld [vmem:[#allocation8 + $0x20] sm:$0xff]  ;;  %p440_p10 = scmp.ne.s32.totalorder %s243_s21, %s439_s22  ;;  %p445_p12 = scmp.lt.s32.totalorder %s439_s22, %s439_s22 }
  0x3a   :  { %306 = vmatpush3.bf16.msra.mxu0 %v305_v7  ;;  %343 = vmatpush3.bf16.msra.mxu1 %v305_v7  ;;  %v309_v13 = vpack.c.bf16 %v83_v10, %v82_v9  ;;  %v311_v14 = vpack.c.bf16 %v101_v12, %v100_v11  ;;  %v85_v16 = vld [vmem:[#allocation8 + $0x28] sm:$0xff]  ;;  %v102_v17 = vld [vmem:[#allocation8 + $0xb0] sm:$0xff]  ;;  %v103_v18 = vld [vmem:[#allocation8 + $0xb8] sm:$0xff] }
  0x3b   :  { %308 = vmatprep.subr.bf16.mxu0 %v307_v8  ;;  %336 = vmatprep.subr.bf16.mxu1 %v307_v8  ;;  %v313_v19 = vpack.c.bf16 %v85_v16, %v84_v15  ;;  %v315_v20 = vpack.c.bf16 %v103_v18, %v102_v17  ;;  %v86_v21 = vld [vmem:[#allocation8 + $0x30] sm:$0xff]  ;;  %v87_v22 = vld [vmem:[#allocation8 + $0x38] sm:$0xff]  ;;  %v104_v23 = vld [vmem:[#allocation8 + $0xc0] sm:$0xff]  ;;  %p446_p13 = por %p445_p12, %p444_p11 }
  0x3c   :  { %v105_v24 = vld [vmem:[#allocation8 + $0xc8] sm:$0xff]  ;;  %v545_v25 = vld [vmem:[#allocation6] sm:$0xff]  ;;  %v548_v26 = vld [vmem:[#allocation6 + $0x10] sm:$0xff]  ;;  %v317_v27 = vpack.c.bf16 %v87_v22, %v86_v21 }
  0x3d   :  { %176 = vmatprep.mubr.f32.mxu0 %v545_v25  ;;  %v319_v28 = vpack.c.bf16 %v105_v24, %v104_v23  ;;  %v88_v29 = vld [vmem:[#allocation8 + $0x40] sm:$0xff]  ;;  %v89_v30 = vld [vmem:[#allocation8 + $0x48] sm:$0xff]  ;;  %v106_v31 = vld [vmem:[#allocation8 + $0xd0] sm:$0xff]  ;;  %186 = vmatprep.mubr.f32.mxu1 %v548_v26  ;;  %p447_p0 = pnand %p446_p13, %p440_p10 }
  0x3e   :  { %310 = vmatpush3.bf16.msra.mxu0 %v309_v13  ;;  %344 = vmatpush3.bf16.msra.mxu1 %v309_v13  ;;  %v107_v32 = vld [vmem:[#allocation8 + $0xd8] sm:$0xff]  ;;  %v321_v33 = vpack.c.bf16 %v89_v30, %v88_v29  ;;  %v90_v35 = vld [vmem:[#allocation8 + $0x50] sm:$0xff]  ;;  %v108_v37 = vld [vmem:[#allocation8 + $0xe0] sm:$0xff] }
  0x3f   :  { %312 = vmatprep.subr.bf16.mxu0 %v311_v14  ;;  %337 = vmatprep.subr.bf16.mxu1 %v311_v14  ;;  %v323_v34 = vpack.c.bf16 %v107_v32, %v106_v31  ;;  %v91_v36 = vld [vmem:[#allocation8 + $0x58] sm:$0xff]  ;;  %v109_v38 = vld [vmem:[#allocation8 + $0xe8] sm:$0xff]  ;;  %v92_v41 = vld [vmem:[#allocation8 + $0x60] sm:$0xff] }
  0x40   :  { %v325_v39 = vpack.c.bf16 %v91_v36, %v90_v35  ;;  %v327_v40 = vpack.c.bf16 %v109_v38, %v108_v37  ;;  %v93_v42 = vld [vmem:[#allocation8 + $0x68] sm:$0xff]  ;;  %v110_v43 = vld [vmem:[#allocation8 + $0xf0] sm:$0xff]  ;;  %v111_v44 = vld [vmem:[#allocation8 + $0xf8] sm:$0xff] }
  0x41   :  { %v329_v45 = vpack.c.bf16 %v93_v42, %v92_v41  ;;  %v331_v46 = vpack.c.bf16 %v111_v44, %v110_v43  ;;  %v94_v47 = vld [vmem:[#allocation8 + $0x70] sm:$0xff]  ;;  %v95_v48 = vld [vmem:[#allocation8 + $0x78] sm:$0xff]  ;;  %v56_v50 = vld [vmem:[#allocation3] sm:$0xff] }
  0x42   :  { %314 = vmatpush3.bf16.msra.mxu0 %v313_v19  ;;  %345 = vmatpush3.bf16.msra.mxu1 %v313_v19  ;;  %v333_v49 = vpack.c.bf16 %v95_v48, %v94_v47  ;;  %v58_v51 = vld [vmem:[#allocation3 + $0x10] sm:$0xff]  ;;  %v61_v52 = vld [vmem:[#allocation6 + $0x8] sm:$0xff]  ;;  %v63_v53 = vld [vmem:[#allocation6 + $0x18] sm:$0xff]  ;;  %v221_v16 = vsub.f32 %v56_v50, %v545_v25 }
  0x43   :  { %316 = vmatprep.subr.bf16.mxu0 %v315_v20  ;;  %338 = vmatprep.subr.bf16.mxu1 %v315_v20  ;;  %v57_v54 = vld [vmem:[#allocation3 + $0x8] sm:$0xff]  ;;  %v59_v55 = vld [vmem:[#allocation3 + $0x18] sm:$0xff]  ;;  %v223_v17 = vsub.f32 %v58_v51, %v548_v26 }
  0x44   :  { %v222_v20 = vsub.f32 %v57_v54, %v61_v52  ;;  %v224_v22 = vsub.f32 %v59_v55, %v63_v53 }
  0x46   :  { %318 = vmatpush3.bf16.msra.mxu0 %v317_v27  ;;  %346 = vmatpush3.bf16.msra.mxu1 %v317_v27 }
  0x47   :  { %320 = vmatprep.subr.bf16.mxu0 %v319_v28  ;;  %339 = vmatprep.subr.bf16.mxu1 %v319_v28 }
  0x4a   :  { %322 = vmatpush3.bf16.msra.mxu0 %v321_v33  ;;  %347 = vmatpush3.bf16.msra.mxu1 %v321_v33 }
  0x4b   :  { %324 = vmatprep.subr.bf16.mxu0 %v323_v34  ;;  %340 = vmatprep.subr.bf16.mxu1 %v323_v34 }
  0x4e   :  { %326 = vmatpush3.bf16.msra.mxu0 %v325_v39  ;;  %348 = vmatpush3.bf16.msra.mxu1 %v325_v39 }
  0x4f   :  { %328 = vmatprep.subr.bf16.mxu0 %v327_v40  ;;  %341 = vmatprep.subr.bf16.mxu1 %v327_v40 }
  0x52   :  { %330 = vmatpush3.bf16.msra.mxu0 %v329_v45  ;;  %349 = vmatpush3.bf16.msra.mxu1 %v329_v45 }
  0x53   :  { %332 = vmatprep.subr.bf16.mxu0 %v331_v46  ;;  %342 = vmatprep.subr.bf16.mxu1 %v331_v46 }
  0x56   :  { %334 = vmatpush3.bf16.msra.mxu0 %v333_v49  ;;  %350 = vmatpush3.bf16.msra.mxu1 %v333_v49 }
  0x59   :  { %177 = vmatmul.mubr.f32.vlgmr.msra.gmra.mrb[0].mxu0 %v56_v50  ;;  %187 = vmatmul.mubr.f32.vlgmr.msra.gmra.mrb[0].mxu1 %v58_v51 }
  0x5a   :  { %181 = vmatprep.mubr.f32.mxu0 %v61_v52  ;;  %191 = vmatprep.mubr.f32.mxu1 %v63_v53 }
  0x5d   :  { %182 = vmatmul.mubr.f32.gmra.mrb[2].mxu0 %v57_v54  ;;  %192 = vmatmul.mubr.f32.gmra.mrb[2].mxu1 %v59_v55 }
 0x12c   :  { %v291_v56 = vpop.f32.mrb[0].mxu0  ;;  %v297_v57 = vpop.f32.mrb[0].mxu1 }
 0x12d   :  { %v292_v58 = vpop.f32.mrb[1].mxu0  ;;  %v298_v59 = vpop.f32.mrb[1].mxu1 }
 0x12e   :  { %v293_v60 = vadd.f32 %v292_v58, %v291_v56  ;;  %v299_v61 = vadd.f32 %v298_v59, %v297_v57 }
 0x130   :  { %v255_v62 = vmul.f32 -1.442695, %v293_v60  ;;  %v257_v63 = vmul.f32 -1.442695, %v299_v61  ;;  %v294_v0 = vpop.f32.mrb[2].mxu0  ;;  %v300_v1 = vpop.f32.mrb[2].mxu1 }
 0x131   :  { %v295_v2 = vpop.f32.mrb[3].mxu0  ;;  %v301_v3 = vpop.f32.mrb[3].mxu1 }
 0x132   :  { %357 = vpow2.f32 %v255_v62  ;;  %v296_v4 = vadd.f32 %v295_v2, %v294_v0  ;;  %v302_v5 = vadd.f32 %v301_v3, %v300_v1 }
 0x133   :  { %359 = vpow2.f32 %v257_v63 }
 0x134   :  { %v256_v6 = vmul.f32 -1.442695, %v296_v4  ;;  %v258_v7 = vmul.f32 -1.442695, %v302_v5 }
 0x136   :  { %361 = vpow2.f32 %v256_v6 }
 0x137   :  { %363 = vpow2.f32 %v258_v7 }
 0x13c   :  { %v358_v8 = vpop.eup %357 }
 0x13d   :  { %v360_v9 = vpop.eup %359  ;;  %v209_v10 = vadd.f32 1.0, %v358_v8 }
 0x13e   :  { %v211_v11 = vadd.f32 1.0, %v360_v9 }
 0x13f   :  { %365 = vrcp.f32 %v209_v10 }
 0x140   :  { %v362_v12 = vpop.eup %361  ;;  %367 = vrcp.f32 %v211_v11 }
 0x141   :  { %v364_v13 = vpop.eup %363  ;;  %v210_v14 = vadd.f32 1.0, %v362_v12 }
 0x142   :  { %v212_v15 = vadd.f32 1.0, %v364_v13 }
 0x143   :  { %369 = vrcp.f32 %v210_v14 }
 0x144   :  { %371 = vrcp.f32 %v212_v15 }
 0x149   :  { %v366_v18 = vpop.eup %365 }
 0x14a   :  { %v368_v19 = vpop.eup %367  ;;  %v225_v21 = vmul.f32 %v366_v18, %v221_v16 }
 0x14b   :  { %v227_v23 = vmul.f32 %v368_v19, %v223_v17 }
 0x14c   :  { %v229_v24 = vadd.f32 %v225_v21, %v545_v25 }
 0x14d   :  { %v370_v27 = vpop.eup %369  ;;  %v231_v28 = vadd.f32 %v227_v23, %v548_v26 }
 0x14e   :  { %v372_v29 = vpop.eup %371  ;;  %v226_v30 = vmul.f32 %v370_v27, %v222_v20  ;;  %233 = vst [vmem:[#allocation9] sm:$0xff] %v229_v24 }
 0x14f   :  { %v228_v31 = vmul.f32 %v372_v29, %v224_v22  ;;  %235 = vst [vmem:[#allocation9 + $0x10] sm:$0xff] %v231_v28 }
 0x150   :  { %v230_v32 = vadd.f32 %v226_v30, %v61_v52 }
 0x151   :  { %v232_v33 = vadd.f32 %v228_v31, %v63_v53 }
 0x152   :  { %234 = vst [vmem:[#allocation9 + $0x8] sm:$0xff] %v230_v32 }
 0x153   :  { %236 = vst [vmem:[#allocation9 + $0x18] sm:$0xff] %v232_v33 }
 0x154   :  { %450 = shalt.err (!%p447_p0)
}
 0x155   :  { %s451_s27 = scalar_lea.hbm %s573_s3, 512 }
 0x156   :  { %p452_p1 = scmp.ne.s32.totalorder %s573_s3, %s451_s27  ;;  %p455_p2 = scmp.lt.u32.totalorder %s451_s27, %s573_s3 }
 0x158   :  { %p457_p3 = pnand %p455_p2, %p452_p1 }
 0x15a   :  { %460 = shalt.err (!%p457_p3)
}
 0x15b   :  { %248 = dma.vmem_to_hbm [thread:$0]  %s243_s21, 512, %s573_s3, [#allocation5], %s469_s24, %s469_s24, %s470_s25  }
 0x15c   :  { %465 = dma.done.wait [#allocation5], 512  }
 0x15d   :  { %466 = vsyncadd [#allocation5], 4294966784 }
 0x15e   :  { %252 = vsyncpa [#allocation4], 1 }
 0x15f   :  { %253 = vsyncpa [#allocation7], 1 }
 0x160   :  { %254 = vsyncpa [#allocation5], 1 }

</bundles_post_ra>
